<compile_context>
chip_gen: v5e
topology: v5e:2x2
jax: 0.10.0
libtpu: 0.0.40
codegen_flags: <defaults>
</compile_context>

<pallas_src>
import jax
import jax.numpy as jnp
from jax.experimental import pallas as pl
from jax.experimental.pallas import tpu as pltpu


def _round_up(x, m):
    return (x + m - 1) // m * m


def _pad2(a, rows, cols):
    """Zero-pad a 2-D array to (rows, cols); no-op when already that shape."""
    if a.shape == (rows, cols):
        return a
    return jnp.zeros((rows, cols), a.dtype).at[: a.shape[0], : a.shape[1]].set(a)


# --------------------------------------------------------------------------
# Kernel A: embedding lookup (one-hot counts @ table), mean over context,
#           hidden layer + ReLU.  grid = (row tiles, vocab reduction tiles).
# --------------------------------------------------------------------------
def lookup_hidden_kernel(idx_ref, emb_ref, w1_ref, b1_ref, h_ref, acc_ref):
    k = pl.program_id(1)
    nk = pl.num_programs(1)

    @pl.when(k == 0)
    def _init():
        acc_ref[...] = jnp.zeros_like(acc_ref)

    idx = idx_ref[...]                          # (TN, C) int32 token ids
    TN, C = idx.shape
    TV = emb_ref.shape[0]                       # vocab tile size

    # Token-count ("summed one-hot") matrix for this vocab tile, accumulated
    # with int32 VPU adds (native on all generations) and cast to bf16 once.
    # Counts are small integers (<= C), exact in bf16 for C <= 256.
    vocab_ids = jax.lax.broadcasted_iota(jnp.int32, (TN, TV), 1) + k * TV
    counts = jnp.zeros((TN, TV), jnp.int32)
    for c in range(C):                          # C is static (from ref shape)
        counts = counts + (idx[:, c:c + 1] == vocab_ids).astype(jnp.int32)

    # bf16 x bf16 -> f32 MXU matmul; partial sum over the (tiled) vocab axis.
    acc_ref[...] += jnp.dot(counts.astype(jnp.bfloat16), emb_ref[...],
                            preferred_element_type=jnp.float32)      # (TN, E_pad)

    @pl.when(k == nk - 1)
    def _finalize():
        avg = (acc_ref[...] * (1.0 / C)).astype(jnp.bfloat16)         # (TN, E_pad)
        h = jnp.dot(avg, w1_ref[...], preferred_element_type=jnp.float32)
        h = jnp.maximum(h + b1_ref[...], 0.0)                         # f32 bias/ReLU
        h_ref[...] = h.astype(h_ref.dtype)                            # bf16 out


# --------------------------------------------------------------------------
# Kernel B: output projection.  grid = (row tiles, output-vocab tiles),
#           both axes parallel (v7x megacore splits over vocab tiles).
# --------------------------------------------------------------------------
def output_kernel(h_ref, w2_ref, b2_ref, out_ref):
    out = jnp.dot(h_ref[...], w2_ref[...], preferred_element_type=jnp.float32)
    out_ref[...] = out + b2_ref[...]


# --------------------------------------------------------------------------
# One-time parameter preparation (pad / transpose / cast).  Call once and
# reuse across forward calls; only the token ids are handled per call.
# --------------------------------------------------------------------------
def cbow_prepare_params(emb, w1, b1, w2, b2):
    V, E = emb.shape
    H = w1.shape[0]

    E_pad = _round_up(E, 128)
    H_pad = _round_up(H, 128)
    v_tile = min(2048, _round_up(V, 128))       # cap keeps v7x VMEM headroom
    v_p = _round_up(V, v_tile)

    emb_p = _pad2(emb.astype(jnp.bfloat16), v_p, E_pad)               # (Vp, Ep)
    w1t_p = _pad2(w1.T.astype(jnp.bfloat16), E_pad, H_pad)            # (Ep, Hp)
    b1_p = _pad2(b1.reshape(1, H).astype(jnp.float32), 1, H_pad)      # (1, Hp)
    w2t_p = _pad2(w2.T.astype(jnp.bfloat16), H_pad, v_p)              # (Hp, Vp)
    b2_p = _pad2(b2.reshape(1, V).astype(jnp.float32), 1, v_p)        # (1, Vp)

    dims = dict(V=V, E=E, H=H, E_pad=E_pad, H_pad=H_pad, v_tile=v_tile, v_p=v_p)
    return (emb_p, w1t_p, b1_p, w2t_p, b2_p), dims


def cbow_forward(x, params, dims):
    """x: (D0, B, C) int tokens; returns output[0] of shape (B, V) in f32."""
    emb_p, w1t_p, b1_p, w2t_p, b2_p = params
    V, E_pad, H_pad = dims["V"], dims["E_pad"], dims["H_pad"]
    v_tile, v_p = dims["v_tile"], dims["v_p"]

    D0, B, C = x.shape
    # The module returns output[0]; only that slice along dim 0 is computed.
    idx = x[0].astype(jnp.int32)                                      # (B, C)

    row_tile = min(256, _round_up(B, 8))
    rows_p = _round_up(B, row_tile)
    idx_p = idx if rows_p == B else jnp.zeros((rows_p, C), jnp.int32).at[:B].set(idx)

    n_row = rows_p // row_tile
    n_vt = v_p // v_tile

    # ---------------- kernel A: lookup + mean + hidden -------------------
    flops_a = 2 * rows_p * v_p * E_pad + 2 * rows_p * E_pad * H_pad
    bytes_a = (idx_p.size * 4 + emb_p.size * n_row * 2 + w1t_p.size * 2
               + b1_p.size * 4 + rows_p * H_pad * 2)

    h = pl.pallas_call(
        lookup_hidden_kernel,
        out_shape=jax.ShapeDtypeStruct((rows_p, H_pad), jnp.bfloat16),
        grid=(n_row, n_vt),
        in_specs=[
            pl.BlockSpec((row_tile, C), lambda i, k: (i, 0)),         # token ids
            pl.BlockSpec((v_tile, E_pad), lambda i, k: (k, 0)),       # emb table tile
            pl.BlockSpec((E_pad, H_pad), lambda i, k: (0, 0)),        # W1^T
            pl.BlockSpec((1, H_pad), lambda i, k: (0, 0)),            # b1
        ],
        out_specs=pl.BlockSpec((row_tile, H_pad), lambda i, k: (i, 0)),
        scratch_shapes=[pltpu.VMEM((row_tile, E_pad), jnp.float32)],  # avg-emb acc
        compiler_params=pltpu.CompilerParams(
            dimension_semantics=("parallel", "arbitrary")),
        cost_estimate=pl.CostEstimate(flops=int(flops_a), transcendentals=0,
                                      bytes_accessed=int(bytes_a)),
    )(idx_p, emb_p, w1t_p, b1_p)

    # ---------------- kernel B: output projection ------------------------
    flops_b = 2 * rows_p * H_pad * v_p
    bytes_b = (rows_p * H_pad * n_vt * 2 + w2t_p.size * 2 + b2_p.size * 4
               + rows_p * v_p * 4)

    out = pl.pallas_call(
        output_kernel,
        out_shape=jax.ShapeDtypeStruct((rows_p, v_p), jnp.float32),
        grid=(n_row, n_vt),
        in_specs=[
            pl.BlockSpec((row_tile, H_pad), lambda i, j: (i, 0)),     # h tile
            pl.BlockSpec((H_pad, v_tile), lambda i, j: (0, j)),       # W2^T tile
            pl.BlockSpec((1, v_tile), lambda i, j: (0, j)),           # b2 tile
        ],
        out_specs=pl.BlockSpec((row_tile, v_tile), lambda i, j: (i, j)),
        compiler_params=pltpu.CompilerParams(
            dimension_semantics=("parallel", "parallel")),            # v7x: 2 TCs
        cost_estimate=pl.CostEstimate(flops=int(flops_b), transcendentals=0,
                                      bytes_accessed=int(bytes_b)),
    )(h, w2t_p, b2_p)

    return out[:B, :V]


def cbow_reference(x, emb, w1, b1, w2, b2):
    embeddings = emb[x]                       # (D0, B, C, E)
    avg = jnp.mean(embeddings, axis=2)        # (D0, B, E)
    h = jnp.maximum(avg @ w1.T + b1, 0.0)     # (D0, B, H)
    out = h @ w2.T + b2                       # (D0, B, V)
    return out[0]


if __name__ == "__main__":
    vocab_size, hidden_size, embedding_dim = 128, 32, 32
    D0, B, C = 3, 2, 8                        # leading dim, batch, context window

    key = jax.random.PRNGKey(0)
    k = jax.random.split(key, 6)
    emb = jax.random.normal(k[0], (vocab_size, embedding_dim), jnp.float32) * 0.1
    w1 = jax.random.normal(k[1], (hidden_size, embedding_dim), jnp.float32) * 0.1
    b1 = jax.random.normal(k[2], (hidden_size,), jnp.float32) * 0.1
    w2 = jax.random.normal(k[3], (vocab_size, hidden_size), jnp.float32) * 0.1
    b2 = jax.random.normal(k[4], (vocab_size,), jnp.float32) * 0.1
    x = jax.random.randint(k[5], (D0, B, C), 0, vocab_size, jnp.int32)

    # One-time parameter prep (padding / transpose / bf16 cast), hoisted out
    # of the per-call path; the forward itself is jitted.
    params, dims = cbow_prepare_params(emb, w1, b1, w2, b2)
    fwd = jax.jit(lambda xi: cbow_forward(xi, params, dims))

    out = fwd(x)
    jax.block_until_ready(out)
    assert out.shape == (B, vocab_size)

    # Structural check: identical math with all parameters rounded to bf16
    # (the precision the kernels use on the MXU) -> agrees to f32/bf16
    # intermediate-rounding level.
    def r(a):
        return a.astype(jnp.bfloat16).astype(jnp.float32)
    ref_bf = cbow_reference(x, r(emb), r(w1), b1, r(w2), b2)
    assert jnp.allclose(out, ref_bf, atol=5e-3, rtol=5e-3)

    # Full-f32 reference; tolerance reflects the bf16-MXU contract of the
    # kernel (bf16 operands, f32 accumulation).
    ref = cbow_reference(x, emb, w1, b1, w2, b2)
    assert jnp.allclose(out, ref, atol=1e-2, rtol=1e-2)

    print("KERNEL_OK")
</pallas_src>

<mosaic_0001>
module attributes {stable_mosaic.version = 11 : i64} {
  func.func @output_kernel(%arg0: i32, %arg1: i32, %arg2: memref<8x128xbf16, #tpu.memory_space<vmem>>, %arg3: memref<128x128xbf16, #tpu.memory_space<vmem>>, %arg4: memref<1x128xf32, #tpu.memory_space<vmem>>, %arg5: memref<8x128xf32, #tpu.memory_space<vmem>>) attributes {dimension_semantics = [#tpu.dimension_semantics<parallel>, #tpu.dimension_semantics<parallel>], iteration_bounds = array<i64: 1, 1>, scalar_prefetch = 0 : i64, scratch_operands = 0 : i64, tpu.core_type = #tpu.core_type<tc>, window_params = [{transform_indices = @transform_0, window_bounds = array<i64: 8, 128>}, {transform_indices = @transform_1, window_bounds = array<i64: 128, 128>}, {transform_indices = @transform_2, window_bounds = array<i64: 1, 128>}, {transform_indices = @transform_3, window_bounds = array<i64: 8, 128>}]} {
    %c0 = arith.constant 0 : index
    %c0_0 = arith.constant 0 : index
    %0 = vector.load %arg2[%c0, %c0_0] : memref<8x128xbf16, #tpu.memory_space<vmem>>, vector<8x128xbf16>
    %c0_1 = arith.constant 0 : index
    %c0_2 = arith.constant 0 : index
    %1 = vector.load %arg3[%c0_1, %c0_2] : memref<128x128xbf16, #tpu.memory_space<vmem>>, vector<128x128xbf16>
    %cst = arith.constant dense<0.000000e+00> : vector<8x128xf32>
    %2 = tpu.matmul %0, %1, %cst {dimension_numbers = #tpu.dot_dimension_numbers<[1], [0], [0], [1], [0, 0, 1, 1], [], []>} : vector<8x128xbf16>, vector<128x128xbf16>, vector<8x128xf32> -> vector<8x128xf32>
    %c0_3 = arith.constant 0 : index
    %c0_4 = arith.constant 0 : index
    %3 = vector.load %arg4[%c0_3, %c0_4] : memref<1x128xf32, #tpu.memory_space<vmem>>, vector<1x128xf32>
    %4 = vector.broadcast %3 : vector<1x128xf32> to vector<8x128xf32>
    %5 = arith.addf %2, %4 : vector<8x128xf32>
    %c0_5 = arith.constant 0 : index
    %c0_6 = arith.constant 0 : index
    %6 = vector.load %arg5[%c0_5, %c0_6] : memref<8x128xf32, #tpu.memory_space<vmem>>, vector<8x128xf32>
    tpu.vector_store %arg5[%c0_5, %c0_6], %5 {strides = array<i32>} : memref<8x128xf32, #tpu.memory_space<vmem>>, vector<8x128xf32>,
    return
  }
  func.func @transform_0(%arg0: i32, %arg1: i32) -> (i32, i32) {
    %c0_i32 = arith.constant 0 : i32
    %c0_i32_0 = arith.constant 0 : i32
    return %arg0, %c0_i32 : i32, i32
  }
  func.func @transform_1(%arg0: i32, %arg1: i32) -> (i32, i32) {
    %c0_i32 = arith.constant 0 : i32
    %c0_i32_0 = arith.constant 0 : i32
    return %c0_i32, %arg1 : i32, i32
  }
  func.func @transform_2(%arg0: i32, %arg1: i32) -> (i32, i32) {
    %c0_i32 = arith.constant 0 : i32
    %c0_i32_0 = arith.constant 0 : i32
    return %c0_i32, %arg1 : i32, i32
  }
  func.func @transform_3(%arg0: i32, %arg1: i32) -> (i32, i32) {
    %c0_i32 = arith.constant 0 : i32
    return %arg0, %arg1 : i32, i32
  }
}

module attributes {stable_mosaic.version = 11 : i64} {
  func.func @lookup_hidden_kernel(%arg0: i32, %arg1: i32, %arg2: memref<8x8xi32, #tpu.memory_space<vmem>>, %arg3: memref<128x128xbf16, #tpu.memory_space<vmem>>, %arg4: memref<128x128xbf16, #tpu.memory_space<vmem>>, %arg5: memref<1x128xf32, #tpu.memory_space<vmem>>, %arg6: memref<8x128xbf16, #tpu.memory_space<vmem>>, %arg7: memref<8x128xf32, #tpu.memory_space<vmem>>) attributes {dimension_semantics = [#tpu.dimension_semantics<parallel>, #tpu.dimension_semantics<arbitrary>], iteration_bounds = array<i64: 1, 1>, scalar_prefetch = 0 : i64, scratch_operands = 1 : i64, tpu.core_type = #tpu.core_type<tc>, window_params = [{transform_indices = @transform_0, window_bounds = array<i64: 8, 8>}, {transform_indices = @transform_1, window_bounds = array<i64: 128, 128>}, {pipeline_mode = #tpu.pipeline_mode<synchronous>, transform_indices = @transform_2, window_bounds = array<i64: 128, 128>}, {pipeline_mode = #tpu.pipeline_mode<synchronous>, transform_indices = @transform_3, window_bounds = array<i64: 1, 128>}, {transform_indices = @transform_4, window_bounds = array<i64: 8, 128>}]} {
    %c0_i32 = arith.constant 0 : i32
    %0 = arith.cmpi eq, %arg1, %c0_i32 : i32
    %1 = arith.extui %0 : i1 to i32
    %c0_i32_0 = arith.constant 0 : i32
    %2 = arith.cmpi ne, %1, %c0_i32_0 : i32
    scf.if %2 {
      %cst_11 = arith.constant 0.000000e+00 : f32
      %58 = vector.broadcast %cst_11 : f32 to vector<8x128xf32>
      %c0_12 = arith.constant 0 : index
      %c0_13 = arith.constant 0 : index
      %59 = vector.load %arg7[%c0_12, %c0_13] : memref<8x128xf32, #tpu.memory_space<vmem>>, vector<8x128xf32>
      tpu.vector_store %arg7[%c0_12, %c0_13], %58 {strides = array<i32>} : memref<8x128xf32, #tpu.memory_space<vmem>>, vector<8x128xf32>,
    } else {
    }
    %c0 = arith.constant 0 : index
    %c0_1 = arith.constant 0 : index
    %3 = vector.load %arg2[%c0, %c0_1] : memref<8x8xi32, #tpu.memory_space<vmem>>, vector<8x8xi32>
    %4 = tpu.iota {dimensions = array<i32: 1>} : vector<8x128xi32>
    %c128_i32 = arith.constant 128 : i32
    %5 = arith.muli %arg1, %c128_i32 : i32
    %6 = vector.broadcast %5 : i32 to vector<8x128xi32>
    %7 = arith.addi %4, %6 : vector<8x128xi32>
    %c0_i32_2 = arith.constant 0 : i32
    %8 = vector.broadcast %c0_i32_2 : i32 to vector<8x128xi32>
    %9 = vector.extract_strided_slice %3 {offsets = [0, 0], sizes = [8, 1], strides = [1, 1]} : vector<8x8xi32> to vector<8x1xi32>
    %10 = vector.broadcast %9 : vector<8x1xi32> to vector<8x128xi32>
    %11 = arith.cmpi eq, %10, %7 : vector<8x128xi32>
    %12 = arith.extui %11 : vector<8x128xi1> to vector<8x128xi32>
    %13 = arith.addi %8, %12 : vector<8x128xi32>
    %14 = vector.extract_strided_slice %3 {offsets = [0, 1], sizes = [8, 1], strides = [1, 1]} : vector<8x8xi32> to vector<8x1xi32>
    %15 = vector.broadcast %14 : vector<8x1xi32> to vector<8x128xi32>
    %16 = arith.cmpi eq, %15, %7 : vector<8x128xi32>
    %17 = arith.extui %16 : vector<8x128xi1> to vector<8x128xi32>
    %18 = arith.addi %13, %17 : vector<8x128xi32>
    %19 = vector.extract_strided_slice %3 {offsets = [0, 2], sizes = [8, 1], strides = [1, 1]} : vector<8x8xi32> to vector<8x1xi32>
    %20 = vector.broadcast %19 : vector<8x1xi32> to vector<8x128xi32>
    %21 = arith.cmpi eq, %20, %7 : vector<8x128xi32>
    %22 = arith.extui %21 : vector<8x128xi1> to vector<8x128xi32>
    %23 = arith.addi %18, %22 : vector<8x128xi32>
    %24 = vector.extract_strided_slice %3 {offsets = [0, 3], sizes = [8, 1], strides = [1, 1]} : vector<8x8xi32> to vector<8x1xi32>
    %25 = vector.broadcast %24 : vector<8x1xi32> to vector<8x128xi32>
    %26 = arith.cmpi eq, %25, %7 : vector<8x128xi32>
    %27 = arith.extui %26 : vector<8x128xi1> to vector<8x128xi32>
    %28 = arith.addi %23, %27 : vector<8x128xi32>
    %29 = vector.extract_strided_slice %3 {offsets = [0, 4], sizes = [8, 1], strides = [1, 1]} : vector<8x8xi32> to vector<8x1xi32>
    %30 = vector.broadcast %29 : vector<8x1xi32> to vector<8x128xi32>
    %31 = arith.cmpi eq, %30, %7 : vector<8x128xi32>
    %32 = arith.extui %31 : vector<8x128xi1> to vector<8x128xi32>
    %33 = arith.addi %28, %32 : vector<8x128xi32>
    %34 = vector.extract_strided_slice %3 {offsets = [0, 5], sizes = [8, 1], strides = [1, 1]} : vector<8x8xi32> to vector<8x1xi32>
    %35 = vector.broadcast %34 : vector<8x1xi32> to vector<8x128xi32>
    %36 = arith.cmpi eq, %35, %7 : vector<8x128xi32>
    %37 = arith.extui %36 : vector<8x128xi1> to vector<8x128xi32>
    %38 = arith.addi %33, %37 : vector<8x128xi32>
    %39 = vector.extract_strided_slice %3 {offsets = [0, 6], sizes = [8, 1], strides = [1, 1]} : vector<8x8xi32> to vector<8x1xi32>
    %40 = vector.broadcast %39 : vector<8x1xi32> to vector<8x128xi32>
    %41 = arith.cmpi eq, %40, %7 : vector<8x128xi32>
    %42 = arith.extui %41 : vector<8x128xi1> to vector<8x128xi32>
    %43 = arith.addi %38, %42 : vector<8x128xi32>
    %44 = vector.extract_strided_slice %3 {offsets = [0, 7], sizes = [8, 1], strides = [1, 1]} : vector<8x8xi32> to vector<8x1xi32>
    %45 = vector.broadcast %44 : vector<8x1xi32> to vector<8x128xi32>
    %46 = arith.cmpi eq, %45, %7 : vector<8x128xi32>
    %47 = arith.extui %46 : vector<8x128xi1> to vector<8x128xi32>
    %48 = arith.addi %43, %47 : vector<8x128xi32>
    %c0_3 = arith.constant 0 : index
    %c0_4 = arith.constant 0 : index
    %49 = vector.load %arg7[%c0_3, %c0_4] : memref<8x128xf32, #tpu.memory_space<vmem>>, vector<8x128xf32>
    %50 = arith.sitofp %48 : vector<8x128xi32> to vector<8x128xbf16>
    %c0_5 = arith.constant 0 : index
    %c0_6 = arith.constant 0 : index
    %51 = vector.load %arg3[%c0_5, %c0_6] : memref<128x128xbf16, #tpu.memory_space<vmem>>, vector<128x128xbf16>
    %cst = arith.constant dense<0.000000e+00> : vector<8x128xf32>
    %52 = tpu.matmul %50, %51, %cst {dimension_numbers = #tpu.dot_dimension_numbers<[1], [0], [0], [1], [0, 0, 1, 1], [], []>} : vector<8x128xbf16>, vector<128x128xbf16>, vector<8x128xf32> -> vector<8x128xf32>
    %53 = arith.addf %49, %52 : vector<8x128xf32>
    %c0_7 = arith.constant 0 : index
    %c0_8 = arith.constant 0 : index
    %54 = vector.load %arg7[%c0_7, %c0_8] : memref<8x128xf32, #tpu.memory_space<vmem>>, vector<8x128xf32>
    tpu.vector_store %arg7[%c0_7, %c0_8], %53 {strides = array<i32>} : memref<8x128xf32, #tpu.memory_space<vmem>>, vector<8x128xf32>,
    %c0_i32_9 = arith.constant 0 : i32
    %55 = arith.cmpi eq, %arg1, %c0_i32_9 : i32
    %56 = arith.extui %55 : i1 to i32
    %c0_i32_10 = arith.constant 0 : i32
    %57 = arith.cmpi ne, %56, %c0_i32_10 : i32
    scf.if %57 {
      %c0_11 = arith.constant 0 : index
      %c0_12 = arith.constant 0 : index
      %58 = vector.load %arg7[%c0_11, %c0_12] : memref<8x128xf32, #tpu.memory_space<vmem>>, vector<8x128xf32>
      %cst_13 = arith.constant 1.250000e-01 : f32
      %59 = vector.broadcast %cst_13 : f32 to vector<8x128xf32>
      %60 = arith.mulf %58, %59 : vector<8x128xf32>
      %61 = arith.truncf %60 : vector<8x128xf32> to vector<8x128xbf16>
      %c0_14 = arith.constant 0 : index
      %c0_15 = arith.constant 0 : index
      %62 = vector.load %arg4[%c0_14, %c0_15] : memref<128x128xbf16, #tpu.memory_space<vmem>>, vector<128x128xbf16>
      %cst_16 = arith.constant dense<0.000000e+00> : vector<8x128xf32>
      %63 = tpu.matmul %61, %62, %cst_16 {dimension_numbers = #tpu.dot_dimension_numbers<[1], [0], [0], [1], [0, 0, 1, 1], [], []>} : vector<8x128xbf16>, vector<128x128xbf16>, vector<8x128xf32> -> vector<8x128xf32>
      %c0_17 = arith.constant 0 : index
      %c0_18 = arith.constant 0 : index
      %64 = vector.load %arg5[%c0_17, %c0_18] : memref<1x128xf32, #tpu.memory_space<vmem>>, vector<1x128xf32>
      %65 = vector.broadcast %64 : vector<1x128xf32> to vector<8x128xf32>
      %66 = arith.addf %63, %65 : vector<8x128xf32>
      %cst_19 = arith.constant 0.000000e+00 : f32
      %67 = vector.broadcast %cst_19 : f32 to vector<8x128xf32>
      %68 = arith.maximumf %66, %67 : vector<8x128xf32>
      %69 = arith.truncf %68 : vector<8x128xf32> to vector<8x128xbf16>
      %c0_20 = arith.constant 0 : index
      %c0_21 = arith.constant 0 : index
      %70 = vector.load %arg6[%c0_20, %c0_21] : memref<8x128xbf16, #tpu.memory_space<vmem>>, vector<8x128xbf16>
      tpu.vector_store %arg6[%c0_20, %c0_21], %69 {strides = array<i32>} : memref<8x128xbf16, #tpu.memory_space<vmem>>, vector<8x128xbf16>,
    } else {
    }
    return
  }
  func.func @transform_0(%arg0: i32, %arg1: i32) -> (i32, i32) {
    %c0_i32 = arith.constant 0 : i32
    %c0_i32_0 = arith.constant 0 : i32
    return %arg0, %c0_i32 : i32, i32
  }
  func.func @transform_1(%arg0: i32, %arg1: i32) -> (i32, i32) {
    %c0_i32 = arith.constant 0 : i32
    %c0_i32_0 = arith.constant 0 : i32
    return %arg1, %c0_i32 : i32, i32
  }
  func.func @transform_2(%arg0: i32, %arg1: i32) -> (i32, i32) {
    %c0_i32 = arith.constant 0 : i32
    %c0_i32_0 = arith.constant 0 : i32
    %c0_i32_1 = arith.constant 0 : i32
    return %c0_i32, %c0_i32_0 : i32, i32
  }
  func.func @transform_3(%arg0: i32, %arg1: i32) -> (i32, i32) {
    %c0_i32 = arith.constant 0 : i32
    %c0_i32_0 = arith.constant 0 : i32
    %c0_i32_1 = arith.constant 0 : i32
    return %c0_i32, %c0_i32_0 : i32, i32
  }
  func.func @transform_4(%arg0: i32, %arg1: i32) -> (i32, i32) {
    %c0_i32 = arith.constant 0 : i32
    %c0_i32_0 = arith.constant 0 : i32
    return %arg0, %c0_i32 : i32, i32
  }
}

</mosaic_0001>

<bundles_post_ra>
// kernel: _lambda_.2
= control target key start
LH: loop header
LB: loop body
LE: loop exit
PB: predicated region body
PF: predicated region fallthrough
CT: control target
= control target key end

     0   :  { %9 = vsyncpa [#allocation4], 0  ;;  %s500_s0 = inlined_call_operand.vmem [shape: s32[8,8], index: 0, kind: input, shape index: {}]   ;;  %s501_s1 = inlined_call_operand.hbm [shape: bf16[128,128], index: 1, kind: input, shape index: {}]   ;;  %s502_s2 = inlined_call_operand.hbm [shape: bf16[128,128], index: 2, kind: input, shape index: {}]   ;;  %s503_s3 = inlined_call_operand.vmem [shape: f32[1,128], index: 3, kind: input, shape index: {}]   ;;  %s504_s4 = inlined_call_operand.vmem [shape: bf16[8,128], index: 4, kind: output, shape index: {}]  }
   0x1   :  { %s17_s17 = sshll.u32 %s501_s1, 4  ;;  %s18_s17 = int_to_ptr.hbm [resolvable:$true] %s17_s17 }
   0x2   :  { %10 = vsyncpa [#allocation6], 0  ;;  %s439_s18 = smov [#allocation3]   ;;  %s30_s22 = sshll.u32 %s502_s2, 4  ;;  %s31_s22 = int_to_ptr.hbm [resolvable:$true] %s30_s22 }
   0x3   :  { %s19_s19 = sshll.u32 %s439_s18, 4  ;;  %s440_s23 = smov 64   ;;  %s20_s19 = int_to_ptr.vmem [resolvable:$true] %s19_s19 }
   0x4   :  { %s441_s24 = smov 4   ;;  %s442_s25 = smov [#allocation5]  }
   0x5   :  { %25 = dma.hbm_to_vmem [thread:$0]  %s18_s17, 1024, %s20_s19, [#allocation4], %s440_s23, %s440_s23, %s441_s24  }
   0x6   :  { %s32_s26 = sshll.u32 %s442_s25, 4  ;;  %s33_s26 = int_to_ptr.vmem [resolvable:$true] %s32_s26 }
   0x7   :  { %38 = dma.hbm_to_vmem [thread:$0]  %s31_s22, 1024, %s33_s26, [#allocation6], %s440_s23, %s440_s23, %s441_s24  }
   0x8   :  { %435 = dma.done.wait [#allocation4], 1024  }
   0x9   :  { %436 = vsyncadd [#allocation4], 4294966272 }
   0xa   :  { %437 = dma.done.wait [#allocation6], 1024  }
   0xb   :  { %438 = vsyncadd [#allocation6], 4294966272  ;;  %v443_v0 = vmov 0   ;;  %v444_v1 = vmov 2   ;;  %v445_v2 = vmov 4   ;;  %v54_v3 = vld [vmem:[%s500_s0] sm:$0xff]  ;;  %v55_v19 = vlaneseq }
   0xc   :  { %377 = vset.pattern.permute.xlu0 %v443_v0  ;;  %379 = vset.pattern.permute.xlu1 %v444_v1  ;;  %v356_v4 = vld [vmem:[#allocation3 + $0x38] sm:$0xff]  ;;  %v446_v5 = vmov 1   ;;  %v447_v6 = vmov 3   ;;  %v448_v7 = vmov 5   ;;  %v449_v8 = vmov 6   ;;  %v355_v10 = vld [vmem:[#allocation3 + $0x30] sm:$0xff] }
   0xd   :  { %381 = vset.pattern.permute.xlu2 %v445_v2  ;;  %61 = vperm.xlu0 %377, %v54_v3   ;;  %v450_v9 = vmov 7   ;;  %v354_v11 = vld [vmem:[#allocation3 + $0x28] sm:$0xff]  ;;  %v353_v12 = vld [vmem:[#allocation3 + $0x20] sm:$0xff]  ;;  %v352_v13 = vld [vmem:[#allocation3 + $0x18] sm:$0xff]  ;;  %v56_v23 = vand.u32 127, %v55_v19 }
   0xe   :  { %72 = vperm.xlu1 %379, %v54_v3   ;;  %84 = vperm.xlu2 %381, %v54_v3   ;;  %v351_v14 = vld [vmem:[#allocation3 + $0x10] sm:$0xff]  ;;  %v350_v15 = vld [vmem:[#allocation3 + $0x8] sm:$0xff]  ;;  %v349_v16 = vld [vmem:[#allocation3] sm:$0xff] }
   0xf   :  { %174 = vmatpush.bf16.msra.mxu0 %v356_v4  ;;  %v364_v18 = vld [vmem:[#allocation5 + $0x38] sm:$0xff]  ;;  %v363_v22 = vld [vmem:[#allocation5 + $0x30] sm:$0xff]  ;;  %v362_v24 = vld [vmem:[#allocation5 + $0x28] sm:$0xff] }
  0x10   :  { %263 = vmatpush.bf16.msra.mxu1 %v364_v18  ;;  %v361_v26 = vld [vmem:[#allocation5 + $0x20] sm:$0xff]  ;;  %v360_v32 = vld [vmem:[#allocation5 + $0x18] sm:$0xff]  ;;  %v359_v38 = vld [vmem:[#allocation5 + $0x10] sm:$0xff] }
  0x11   :  { %v358_v45 = vld [vmem:[#allocation5 + $0x8] sm:$0xff]  ;;  %v357_v51 = vld [vmem:[#allocation5] sm:$0xff] }
  0x12   :  { %v386_v56 = vld [vmem:[%s503_s3] ss:$0 sm:$0xff] }
  0x13   :  { %175 = vmatpush.bf16.msra.mxu0 %v355_v10 }
  0x14   :  { %264 = vmatpush.bf16.msra.mxu1 %v363_v22 }
  0x15   :  { %378 = vset.pattern.permute.xlu0 %v446_v5 }
  0x16   :  { %380 = vset.pattern.permute.xlu1 %v447_v6  ;;  %66 = vperm.xlu0 %378, %v54_v3  }
  0x17   :  { %78 = vperm.xlu1 %380, %v54_v3   ;;  %382 = vset.pattern.permute.xlu2 %v448_v7 }
  0x18   :  { %90 = vperm.xlu2 %382, %v54_v3   ;;  %176 = vmatpush.bf16.msra.mxu0 %v354_v11 }
  0x19   :  { %265 = vmatpush.bf16.msra.mxu1 %v362_v24 }
  0x1c   :  { %177 = vmatpush.bf16.msra.mxu0 %v353_v12 }
  0x1d   :  { %266 = vmatpush.bf16.msra.mxu1 %v361_v26 }
  0x1e   :  { %385 = vset.pattern.permute.xlu0 %v450_v9 }
  0x1f   :  { %383 = vset.pattern.permute.xlu1 %v449_v8 }
  0x20   :  { %96 = vperm.xlu1 %383, %v54_v3   ;;  %384 = vset.pattern.permute.xlu2 %v450_v9 }
  0x21   :  { %102 = vperm.xlu2 %384, %v54_v3   ;;  %178 = vmatpush.bf16.msra.mxu0 %v352_v13 }
  0x22   :  { %267 = vmatpush.bf16.msra.mxu1 %v360_v32 }
  0x25   :  { %179 = vmatpush.bf16.msra.mxu0 %v351_v14 }
  0x26   :  { %268 = vmatpush.bf16.msra.mxu1 %v359_v38 }
  0x29   :  { %180 = vmatpush.bf16.msra.mxu0 %v350_v15 }
  0x2a   :  { %269 = vmatpush.bf16.msra.mxu1 %v358_v45 }
  0x2d   :  { %181 = vmatpush.bf16.msra.mxu0 %v349_v16 }
  0x2e   :  { %270 = vmatpush.bf16.msra.mxu1 %v357_v51 }
  0x68   :  { %v85_v17 = vpop.permute.xlu2 %84 }
  0x69   :  { %vm86_vm4 = vcmp.eq.s32.totalorder %v85_v17, %v56_v23 }
  0x6a   :  { %v87_v39 = vsel %vm86_vm4, 1, %v443_v0 }
  0x72   :  { %v91_v25 = vpop.permute.xlu2 %90 }
  0x73   :  { %vm92_vm5 = vcmp.eq.s32.totalorder %v91_v25, %v56_v23 }
  0x74   :  { %v93_v42 = vsel %vm92_vm5, 1, %v443_v0 }
  0x7b   :  { %v103_v36 = vpop.permute.xlu2 %102 }
  0x7c   :  { %vm104_vm6 = vcmp.eq.s32.totalorder %v103_v36, %v56_v23 }
  0x7d   :  { %v105_v46 = vsel %vm104_vm6, 1, %v443_v0 }
  0x7f   :  { %v62_v20 = vpop.permute.xlu0 %61 }
  0x80   :  { %v73_v21 = vpop.permute.xlu1 %72  ;;  %vm63_vm0 = vcmp.eq.s32.totalorder %v62_v20, %v56_v23 }
  0x81   :  { %vm74_vm1 = vcmp.eq.s32.totalorder %v73_v21, %v56_v23  ;;  %v64_v29 = vsel %vm63_vm0, 1, %v443_v0 }
  0x82   :  { %v75_v33 = vsel %vm74_vm1, 1, %v443_v0 }
  0x88   :  { %v67_v27 = vpop.permute.xlu0 %66 }
  0x89   :  { %v79_v28 = vpop.permute.xlu1 %78  ;;  %vm68_vm2 = vcmp.eq.s32.totalorder %v67_v27, %v56_v23 }
  0x8a   :  { %v69_v30 = vsel %vm68_vm2, 1, %v443_v0  ;;  %vm80_vm3 = vcmp.eq.s32.totalorder %v79_v28, %v56_v23 }
  0x8b   :  { %v70_v31 = vadd.s32 %v69_v30, %v64_v29  ;;  %v81_v35 = vsel %vm80_vm3, 1, %v443_v0 }
  0x8d   :  { %v76_v34 = vadd.s32 %v75_v33, %v70_v31 }
  0x8f   :  { %v82_v37 = vadd.s32 %v81_v35, %v76_v34 }
  0x91   :  { %v88_v40 = vadd.s32 %v87_v39, %v82_v37 }
  0x92   :  { %v97_v41 = vpop.permute.xlu1 %96 }
  0x93   :  { %vm98_vm7 = vcmp.eq.s32.totalorder %v97_v41, %v56_v23  ;;  %v94_v43 = vadd.s32 %v93_v42, %v88_v40 }
  0x94   :  { %v99_v44 = vsel %vm98_vm7, 1, %v443_v0 }
  0x95   :  { %v100_v47 = vadd.s32 %v99_v44, %v94_v43 }
  0x97   :  { %v106_v48 = vadd.s32 %v105_v46, %v100_v47 }
  0x99   :  { %v108_v49 = vcvt.s32.f32 %v106_v48 }
  0x9b   :  { %v109_v50 = vpack.c.bf16 %v108_v49, %v108_v49 }
  0x9d   :  { %182 = vmatmul.bf16.vlgmr.msra.gmra.mxu0 %v109_v50 }
 0x11a   :  { %v183_v52 = vpop.f32.mrf.mxu0 }
 0x11b   :  { %v193_v53 = vmul.f32 0.125, %v183_v52 }
 0x11d   :  { %v194_v54 = vpack.c.bf16 %v193_v53, %v193_v53 }
 0x11f   :  { %271 = vmatmul.bf16.vlgmr.msra.gmra.mxu1 %v194_v54 }
 0x122   :  { %v185_v55 = vpop.f32.mrf.mxu0 }
 0x19c   :  { %v272_v57 = vpop.f32.mrf.mxu1 }
 0x19d   :  { %v273_v58 = vadd.f32 %v386_v56, %v272_v57 }
 0x19f   :  { %v276_v59 = vmax.f32 %v273_v58, 0.0 }
 0x1a1   :  { %v277_v60 = vpack.c.bf16 %v276_v59, %v276_v59 }
 0x1a3   :  { %278 = vst [vmem:[%s504_s4] sm:$0xf] %v277_v60 }
 0x1a4   :  { %v274_v61 = vpop.f32.mrf.mxu1 }
 0x1a5   :  { %283 = vsyncpa [#allocation4], 1 }
 0x1a6   :  { %284 = vsyncpa [#allocation6], 1 }

// kernel: _lambda_.3
= control target key start
LH: loop header
LB: loop body
LE: loop exit
PB: predicated region body
PF: predicated region fallthrough
CT: control target
= control target key end

     0   :  { %s195_s1 = inlined_call_operand.vmem [shape: bf16[128,128], index: 1, kind: input, shape index: {}]   ;;  %s196_s2 = inlined_call_operand.vmem [shape: f32[1,128], index: 2, kind: input, shape index: {}]   ;;  %s197_s0 = inlined_call_operand.vmem [shape: bf16[8,128], index: 0, kind: input, shape index: {}]   ;;  %s198_s3 = inlined_call_operand.vmem [shape: f32[8,128], index: 3, kind: output, shape index: {}]  }
   0x1   :  { %v140_v0 = vld [vmem:[%s195_s1 + $0x38] sm:$0xff]  ;;  %v139_v1 = vld [vmem:[%s195_s1 + $0x30] sm:$0xff]  ;;  %v138_v2 = vld [vmem:[%s195_s1 + $0x28] sm:$0xff] }
   0x2   :  { %83 = vmatpush.bf16.msra.mxu0 %v140_v0  ;;  %v137_v3 = vld [vmem:[%s195_s1 + $0x20] sm:$0xff]  ;;  %v136_v4 = vld [vmem:[%s195_s1 + $0x18] sm:$0xff]  ;;  %v135_v5 = vld [vmem:[%s195_s1 + $0x10] sm:$0xff] }
   0x3   :  { %v134_v6 = vld [vmem:[%s195_s1 + $0x8] sm:$0xff]  ;;  %v133_v7 = vld [vmem:[%s195_s1] sm:$0xff] }
   0x4   :  { %v14_v8 = vld [vmem:[%s197_s0] sm:$0xf] }
   0x5   :  { %v141_v9 = vld [vmem:[%s196_s2] ss:$0 sm:$0xff] }
   0x6   :  { %84 = vmatpush.bf16.msra.mxu0 %v139_v1 }
   0xa   :  { %85 = vmatpush.bf16.msra.mxu0 %v138_v2 }
   0xe   :  { %86 = vmatpush.bf16.msra.mxu0 %v137_v3 }
  0x12   :  { %87 = vmatpush.bf16.msra.mxu0 %v136_v4 }
  0x16   :  { %88 = vmatpush.bf16.msra.mxu0 %v135_v5 }
  0x1a   :  { %89 = vmatpush.bf16.msra.mxu0 %v134_v6 }
  0x1e   :  { %90 = vmatpush.bf16.msra.mxu0 %v133_v7 }
  0x21   :  { %91 = vmatmul.bf16.vlgmr.msra.gmra.mxu0 %v14_v8 }
  0x9e   :  { %v92_v10 = vpop.f32.mrf.mxu0 }
  0x9f   :  { %v93_v11 = vadd.f32 %v141_v9, %v92_v10 }
  0xa1   :  { %96 = vst [vmem:[%s198_s3] sm:$0xff] %v93_v11 }
  0xa6   :  { %v94_v12 = vpop.f32.mrf.mxu0 }

</bundles_post_ra>
